<compile_context>
chip_gen: v7x
topology: tpu7x:2x2x1
jax: 0.10.0
libtpu: 0.0.40
codegen_flags: <defaults>
</compile_context>

<pallas_src>
import jax
import jax.numpy as jnp
from jax.experimental import pallas as pl
from jax.experimental.pallas import tpu as pltpu


def _affine_kernel(x_ref, s_ref, b_ref, o_ref):
    # s_ref/b_ref are (TM, 1) (per-row params) or (1, TW) (per-column params);
    # either broadcasts against the (TM, TW) activation tile on the VPU.
    o_ref[...] = (x_ref[...] * s_ref[...] + b_ref[...]).astype(o_ref.dtype)


def _floor_align(v, a):
    """Largest multiple of `a` that is <= v (never below `a`)."""
    return max(a, (v // a) * a)


def affine_forward(x, weight, bias, *, tile_budget_bytes=8 * 2**20):
    """Forward of RIFormer Affine: depthwise-1x1-conv(x) - x.

    x:      (N, C, H, W)
    weight: (C,) or the PyTorch conv weight (C, 1, 1, 1)
    bias:   (C,)
    """
    N, C, H, W = x.shape
    hw = H * W
    dtype = x.dtype
    itemsize = jnp.dtype(dtype).itemsize

    # Native 16-bit FMA on bf16/f16 inputs (v6e/v7x VPU is bf16-native);
    # f32 math otherwise.
    compute_dtype = dtype if dtype in (jnp.bfloat16, jnp.float16) else jnp.float32

    weight = jnp.asarray(weight).reshape(-1)          # accept (C,1,1,1) or (C,)
    bias = jnp.asarray(bias).reshape(-1)
    scale = (weight.astype(jnp.float32) - 1.0).astype(compute_dtype)
    bias_c = bias.astype(jnp.float32).astype(compute_dtype)

    # ---- layout: keep the lane dimension dense ----
    if hw >= 128:
        # (N*C, H*W) view, per-row (channel-matched) scale/bias.
        rows, cols = N * C, hw
        x2 = x.reshape(rows, cols)
        s2 = jnp.broadcast_to(scale[None, :], (N, C)).reshape(rows, 1)
        b2 = jnp.broadcast_to(bias_c[None, :], (N, C)).reshape(rows, 1)
        params_per_row = True
    else:
        # Small spatial stages (e.g. 7x7 = 49): (N, C*H*W) view restores full
        # 128-lane density; scale/bias become a per-column strip.
        rows, cols = N, C * hw
        x2 = x.reshape(rows, cols)
        s2 = jnp.repeat(scale, hw).reshape(1, cols)
        b2 = jnp.repeat(bias_c, hw).reshape(1, cols)
        params_per_row = False

    # ---- tile sizing (byte budget, dtype-aware alignment) ----
    sub = max(8, 32 // itemsize)          # sublane align: f32 8, bf16 16, i8 32
    lane = 128
    budget_elems = max(tile_budget_bytes // itemsize, sub * lane)

    if cols * sub <= budget_elems or cols % lane != 0:
        # Prefer full-width column tiles: each row tile is one contiguous HBM
        # burst.  Mandatory when cols isn't a multiple of 128 (only the
        # full-extent block is legal then).
        tw = cols
        tm = min(rows, _floor_align(budget_elems // max(cols, 1), sub))
    else:
        tm = sub
        tw = min(cols, _floor_align(budget_elems // sub, lane))

    gm, gn = pl.cdiv(rows, tm), pl.cdiv(cols, tw)

    # Guarantee >=2 grid steps on big slabs so v7x's two TensorCores split
    # the streaming work (irrelevant for tiny arrays).
    if gm * gn == 1 and rows >= 2 * sub and rows * cols * itemsize > (2 << 20):
        tm = _floor_align(pl.cdiv(rows, 2), sub)
        gm = pl.cdiv(rows, tm)

    tile_bytes = tm * tw * itemsize
    # Double-buffered x-in + out tiles (~4x tile) + params/scratch headroom.
    vmem_limit = int(min(48 * 2**20, max(32 * 2**20, 4 * tile_bytes + 8 * 2**20)))

    # ---- specs ----
    if gn == 1:
        grid = (gm,)
        x_spec = pl.BlockSpec((tm, tw), lambda i: (i, 0))
        if params_per_row:
            p_spec = pl.BlockSpec((tm, 1), lambda i: (i, 0))
        else:
            p_spec = pl.BlockSpec((1, tw), lambda i: (0, 0))
        out_spec = pl.BlockSpec((tm, tw), lambda i: (i, 0))
        dim_sem = ("parallel",)
    else:
        grid = (gm, gn)
        x_spec = pl.BlockSpec((tm, tw), lambda i, j: (i, j))
        if params_per_row:
            p_spec = pl.BlockSpec((tm, 1), lambda i, j: (i, 0))
        else:
            p_spec = pl.BlockSpec((1, tw), lambda i, j: (0, j))
        out_spec = pl.BlockSpec((tm, tw), lambda i, j: (i, j))
        dim_sem = ("parallel", "parallel")

    # Note: input_output_aliases={0: 0} could donate x's HBM buffer when the
    # caller no longer needs x; left off here since main() reuses x.
    out2 = pl.pallas_call(
        _affine_kernel,
        out_shape=jax.ShapeDtypeStruct((rows, cols), dtype),
        grid=grid,
        in_specs=[x_spec, p_spec, p_spec],
        out_specs=out_spec,
        compiler_params=pltpu.CompilerParams(
            dimension_semantics=dim_sem,
            vmem_limit_bytes=vmem_limit,
        ),
    )(x2, s2, b2)

    return out2.reshape(N, C, H, W)


def _reference(x, weight, bias):
    C = x.shape[1]
    w = jnp.asarray(weight).reshape(1, C, 1, 1)
    b = jnp.asarray(bias).reshape(1, C, 1, 1)
    return (w * x + b) - x


if __name__ == "__main__":
    key = jax.random.PRNGKey(0)
    kx, kw, kb, kx2 = jax.random.split(key, 4)

    # Case 1: H*W >= 128 -> (N*C, H*W) lane-dense path.
    N, C, H, W = 2, 4, 16, 16
    x = jax.random.normal(kx, (N, C, H, W), dtype=jnp.float32)
    # Synthetic params matching nn.Conv2d(C, C, 1, groups=C, bias=True):
    # conv weight (C,1,1,1) flattened to (C,), bias (C,).
    weight = jax.random.normal(kw, (C,), dtype=jnp.float32)
    bias = jax.random.normal(kb, (C,), dtype=jnp.float32)

    out = jax.block_until_ready(affine_forward(x, weight, bias))
    ref = _reference(x, weight, bias)
    assert out.shape == (N, C, H, W)
    assert jnp.allclose(out, ref, atol=1e-5, rtol=1e-5)

    # Case 2: small spatial stage (H*W < 128) -> (N, C*H*W) fallback path.
    Hs = Ws = 7
    xs = jax.random.normal(kx2, (N, C, Hs, Ws), dtype=jnp.float32)
    outs = jax.block_until_ready(affine_forward(xs, weight, bias))
    refs = _reference(xs, weight, bias)
    assert outs.shape == (N, C, Hs, Ws)
    assert jnp.allclose(outs, refs, atol=1e-5, rtol=1e-5)

    print("KERNEL_OK")
</pallas_src>

<mosaic_0001>
module attributes {stable_mosaic.version = 11 : i64} {
  func.func @_affine_kernel(%arg0: i32, %arg1: memref<8x256xf32, #tpu.memory_space<vmem>>, %arg2: memref<8x1xf32, #tpu.memory_space<vmem>>, %arg3: memref<8x1xf32, #tpu.memory_space<vmem>>, %arg4: memref<8x256xf32, #tpu.memory_space<vmem>>) attributes {dimension_semantics = [#tpu.dimension_semantics<parallel>], iteration_bounds = array<i64: 1>, scalar_prefetch = 0 : i64, scratch_operands = 0 : i64, tpu.core_type = #tpu.core_type<tc>, window_params = [{transform_indices = @transform_0, window_bounds = array<i64: 8, 256>}, {transform_indices = @transform_1, window_bounds = array<i64: 8, 1>}, {transform_indices = @transform_2, window_bounds = array<i64: 8, 1>}, {transform_indices = @transform_3, window_bounds = array<i64: 8, 256>}]} {
    %c0 = arith.constant 0 : index
    %c0_0 = arith.constant 0 : index
    %0 = vector.load %arg1[%c0, %c0_0] : memref<8x256xf32, #tpu.memory_space<vmem>>, vector<8x256xf32>
    %c0_1 = arith.constant 0 : index
    %c0_2 = arith.constant 0 : index
    %1 = vector.load %arg2[%c0_1, %c0_2] : memref<8x1xf32, #tpu.memory_space<vmem>>, vector<8x1xf32>
    %2 = vector.broadcast %1 : vector<8x1xf32> to vector<8x256xf32>
    %3 = arith.mulf %0, %2 : vector<8x256xf32>
    %c0_3 = arith.constant 0 : index
    %c0_4 = arith.constant 0 : index
    %4 = vector.load %arg3[%c0_3, %c0_4] : memref<8x1xf32, #tpu.memory_space<vmem>>, vector<8x1xf32>
    %5 = vector.broadcast %4 : vector<8x1xf32> to vector<8x256xf32>
    %6 = arith.addf %3, %5 : vector<8x256xf32>
    %c0_5 = arith.constant 0 : index
    %c0_6 = arith.constant 0 : index
    %7 = vector.load %arg4[%c0_5, %c0_6] : memref<8x256xf32, #tpu.memory_space<vmem>>, vector<8x256xf32>
    tpu.vector_store %arg4[%c0_5, %c0_6], %6 {strides = array<i32>} : memref<8x256xf32, #tpu.memory_space<vmem>>, vector<8x256xf32>,
    return
  }
  func.func @transform_0(%arg0: i32) -> (i32, i32) {
    %c0_i32 = arith.constant 0 : i32
    %c0_i32_0 = arith.constant 0 : i32
    return %arg0, %c0_i32 : i32, i32
  }
  func.func @transform_1(%arg0: i32) -> (i32, i32) {
    %c0_i32 = arith.constant 0 : i32
    %c0_i32_0 = arith.constant 0 : i32
    return %arg0, %c0_i32 : i32, i32
  }
  func.func @transform_2(%arg0: i32) -> (i32, i32) {
    %c0_i32 = arith.constant 0 : i32
    %c0_i32_0 = arith.constant 0 : i32
    return %arg0, %c0_i32 : i32, i32
  }
  func.func @transform_3(%arg0: i32) -> (i32, i32) {
    %c0_i32 = arith.constant 0 : i32
    %c0_i32_0 = arith.constant 0 : i32
    return %arg0, %c0_i32 : i32, i32
  }
}

</mosaic_0001>

<bundles_post_ra>
// kernel: tpu_custom_call.1
= control target key start
LH: loop header
LB: loop body
LE: loop exit
PB: predicated region body
PF: predicated region fallthrough
CT: control target
= control target key end

     0   :  { %s122_s0 = inlined_call_operand.vmem [shape: f32[8,256], index: 0, kind: input, shape index: {}]   ;;  %s123_s1 = inlined_call_operand.vmem [shape: f32[8,1], index: 1, kind: input, shape index: {}]   ;;  %s124_s2 = inlined_call_operand.vmem [shape: f32[8,1], index: 2, kind: input, shape index: {}]   ;;  %s125_s3 = inlined_call_operand.hbm [shape: f32[8,256], index: 3, kind: output, shape index: {}]  }
   0x1   :  { %v17_v0 = vld [vmem:[%s123_s1] sm:$0xff] }
   0x2   :  { %8 = vsyncpa [#allocation3], 0  ;;  %v76_v1 = vmov 0   ;;  %v25_v2 = vld [vmem:[%s124_s2] sm:$0xff]  ;;  %v16_v5 = vld [vmem:[%s122_s0 + $0x8] sm:$0xff]  ;;  %s77_s20 = smov [#allocation2]  }
   0x3   :  { %51 = vset.pattern.permute.xlu0 %v76_v1  ;;  %v15_v4 = vld [vmem:[%s122_s0] sm:$0xff]  ;;  %s41_s1 = sshll.u32 %s77_s20, 4  ;;  %s42_s1 = int_to_ptr.vmem [resolvable:$true] %s41_s1 }
   0x4   :  { %20 = vperm.xlu0 %51, %v17_v0   ;;  %s52_s2 = scalar_lea.vmem %s42_s1, 256  ;;  %p57_p1 = scmp.lt.s32.totalorder %s42_s1, %s42_s1 }
   0x5   :  { %p53_p0 = scmp.ne.s32.totalorder %s42_s1, %s52_s2  ;;  %p58_p2 = scmp.lt.s32.totalorder %s52_s2, %s52_s2 }
   0x7   :  { %p59_p3 = por %p58_p2, %p57_p1 }
   0x8   :  { %28 = vperm.xlu0 %51, %v25_v2  }
   0x9   :  { %p60_p4 = pnand %p59_p3, %p53_p0 }
  0x83   :  { %v21_v3 = vpop.permute.xlu0 %20 }
  0x84   :  { %v23_v6 = vmul.f32 %v21_v3, %v15_v4  ;;  %v24_v7 = vmul.f32 %v21_v3, %v16_v5 }
  0x87   :  { %v29_v8 = vpop.permute.xlu0 %28 }
  0x88   :  { %v31_v9 = vadd.f32 %v29_v8, %v23_v6  ;;  %v32_v10 = vadd.f32 %v29_v8, %v24_v7 }
  0x8a   :  { %33 = vst [vmem:[#allocation2] sm:$0xff] %v31_v9  ;;  %34 = vst [vmem:[#allocation2 + $0x8] sm:$0xff] %v32_v10 }
  0x8b   :  { %63 = shalt.err (!%p60_p4)
}
  0x8c   :  { %s64_s0 = scalar_lea.hbm %s125_s3, 256 }
  0x8d   :  { %p65_p5 = scmp.ne.s32.totalorder %s125_s3, %s64_s0  ;;  %p68_p6 = scmp.lt.u32.totalorder %s64_s0, %s125_s3 }
  0x8f   :  { %p70_p7 = pnand %p68_p6, %p65_p5 }
  0x91   :  { %73 = shalt.err (!%p70_p7)
}
  0x92   :  { %44 = dma.vmem_to_hbm [thread:$0]  %s42_s1, 256, %s125_s3, [#allocation3]  }
  0x93   :  { %74 = dma.done.wait [#allocation3], 256  }
  0x94   :  { %75 = vsyncadd [#allocation3], 4294967040 }
  0x95   :  { %48 = vsyncpa [#allocation3], 1 }

</bundles_post_ra>
